<compile_context>
chip_gen: v7x
topology: tpu7x:2x2x1
jax: 0.10.0
libtpu: 0.0.40
codegen_flags: <defaults>
</compile_context>

<pallas_src>
import jax
import jax.numpy as jnp
from jax import lax
from jax.experimental import pallas as pl
from jax.experimental.pallas import tpu as pltpu


# --------------------------------------------------------------------------- #
# Kernels
# --------------------------------------------------------------------------- #
def _mixup_ce_kernel(logits_ref, side_ref, loss_ref):
    """Mixed cross entropy for one (bn, C) logits tile -> lane-dense (1, bn) row."""
    logits = logits_ref[...].astype(jnp.float32)                 # f32 cast in-register
    bn, c = logits.shape
    cls = lax.broadcasted_iota(jnp.int32, (bn, c), 1)

    # numerically-stable logsumexp per row (exp/log ride the EUP slot)
    m = jnp.max(logits, axis=-1, keepdims=True)                  # (bn, 1)
    lse = m + jnp.log(jnp.sum(jnp.exp(logits - m), axis=-1, keepdims=True))

    t1 = side_ref[:, 0:1]                                        # (bn, 1) int32
    t2 = side_ref[:, 1:2]                                        # (bn, 1) int32
    lm = lax.bitcast_convert_type(side_ref[:, 2:3], jnp.float32) # (bn, 1) f32

    # fused one-hot gather: coef_c = lm*[c==t1] + (1-lm)*[c==t2]; sum_c coef_c == 1
    coef = jnp.where(cls == t1, lm, 0.0) + jnp.where(cls == t2, 1.0 - lm, 0.0)
    picked = jnp.sum(logits * coef, axis=-1, keepdims=True)      # (bn, 1)

    loss_ref[...] = (lse - picked).reshape(1, bn)


def _plain_ce_kernel(logits_ref, side_ref, loss_ref):
    """Per-row cross entropy (non-mixup path) -> lane-dense (1, bn) row."""
    logits = logits_ref[...].astype(jnp.float32)
    bn, c = logits.shape
    cls = lax.broadcasted_iota(jnp.int32, (bn, c), 1)

    m = jnp.max(logits, axis=-1, keepdims=True)
    lse = m + jnp.log(jnp.sum(jnp.exp(logits - m), axis=-1, keepdims=True))

    t1 = side_ref[...]                                           # (bn, 1) int32
    picked = jnp.sum(jnp.where(cls == t1, logits, 0.0), axis=-1, keepdims=True)

    loss_ref[...] = (lse - picked).reshape(1, bn)


# --------------------------------------------------------------------------- #
# Tiling heuristics
# --------------------------------------------------------------------------- #
def _cdiv(a, b):
    return -(-a // b)


def _vmem_limit_bytes():
    """Per-generation scoped-VMEM budget (~48 MiB v7x, ~96 MiB v5e/v6e)."""
    cap = 128 << 20
    try:
        cap = int(getattr(pltpu.get_tpu_info(), "vmem_capacity_bytes", cap))
    except Exception:
        pass
    return max(32 << 20, min(cap * 3 // 4, 100 << 20))


def _pick_block_n(n, c, itemsize, vmem_limit, block_n=None):
    """Rows per grid step: size by bytes, align to sublane packing / 128 lanes."""
    pack = max(8, 32 // max(itemsize, 1))      # rows/vreg: 8 f32, 16 bf16, 32 int8
    if n <= pack:
        return max(n, 1)                       # single (possibly ragged) block
    if block_n is not None:
        bn = int(block_n)
    else:
        # VMEM per row: double-buffered native-dtype tile + ~4 tile-sized f32 temps.
        per_row = c * (2 * itemsize + 16)
        bn = (2 * vmem_limit) // (3 * per_row)
        # past ~8 MiB of input per tile the HBM roofline is already saturated
        bn = min(bn, max(pack, (8 << 20) // (c * itemsize)))
        # keep >= 2 grid steps so the "parallel" axis feeds both v7x TensorCores
        bn = min(bn, _cdiv(n, 2))
        if bn >= 128:
            bn = (bn // 128) * 128             # lane-dense (unmasked) loss stores
    bn = max(pack, (bn // pack) * pack)
    bn = min(bn, (n // pack) * pack)           # last block is a ragged tail, not > N
    return bn


# --------------------------------------------------------------------------- #
# Wrapper
# --------------------------------------------------------------------------- #
def mixup_cross_entropy_loss(output, target1, target2=None, lmpas=None, block_n=None):
    """Pallas TPU forward of MixUpLoss_CrossEntropyLoss.

    output : (N, C) logits, any float dtype (bf16 passes through un-copied)
    target1: (N,) int class indices
    target2: optional (N,) int class indices (mixup partner)
    lmpas  : optional per-sample (or scalar) mixing weights
    """
    output = jnp.asarray(output)               # keep native dtype (no f32 HBM copy)
    n, c = output.shape
    itemsize = jnp.dtype(output.dtype).itemsize

    vmem_limit = _vmem_limit_bytes()
    bn = _pick_block_n(n, c, itemsize, vmem_limit, block_n)
    num_blocks = _cdiv(n, bn)

    mixup = target2 is not None

    def col(v, dtype):
        return jnp.broadcast_to(jnp.asarray(v).astype(dtype).reshape(-1), (n,))

    t1 = col(target1, jnp.int32)
    if mixup:
        t2 = col(target2, jnp.int32)
        lm_bits = lax.bitcast_convert_type(col(lmpas, jnp.float32), jnp.int32)
        side = jnp.stack([t1, t2, lm_bits], axis=1)        # (N, 3) int32, one DMA/step
        kernel = _mixup_ce_kernel
    else:
        side = t1.reshape(n, 1)                             # (N, 1) int32
        kernel = _plain_ce_kernel

    logits_spec = pl.BlockSpec((bn, c), lambda i: (i, 0))   # last dim == full C (legal)
    side_spec = pl.BlockSpec((bn, side.shape[1]), lambda i: (i, 0))
    out_spec = pl.BlockSpec((1, bn), lambda i: (i, 0))      # lane-dense loss stores
    out_shape = jax.ShapeDtypeStruct((num_blocks, bn), jnp.float32)

    cost = pl.CostEstimate(
        flops=(7 if mixup else 5) * n * c,
        transcendentals=n * c + n,
        bytes_accessed=n * c * itemsize + n * 4 * side.shape[1] + num_blocks * bn * 4,
    )
    per_row = pl.pallas_call(
        kernel,
        out_shape=out_shape,
        grid=(num_blocks,),
        in_specs=[logits_spec, side_spec],
        out_specs=out_spec,
        compiler_params=pltpu.CompilerParams(
            dimension_semantics=("parallel",),               # disjoint output blocks
            vmem_limit_bytes=vmem_limit,
        ),
        cost_estimate=cost,
    )(output, side)

    # drop ragged-tail rows, mean over the true batch size
    return jnp.sum(per_row.reshape(-1)[:n]) / n


# --------------------------------------------------------------------------- #
# Reference + tests
# --------------------------------------------------------------------------- #
def _reference(output, target1, target2, lmpas):
    logp = jax.nn.log_softmax(jnp.asarray(output, jnp.float32), axis=-1)
    l1 = -jnp.take_along_axis(logp, jnp.asarray(target1)[:, None], axis=-1)[:, 0]
    l2 = -jnp.take_along_axis(logp, jnp.asarray(target2)[:, None], axis=-1)[:, 0]
    lm = jnp.broadcast_to(jnp.asarray(lmpas, jnp.float32), l1.shape)
    return jnp.mean(l1 * lm + l2 * (1.0 - lm))


if __name__ == "__main__":
    key = jax.random.PRNGKey(0)
    k1, k2, k3, k4, k5, k6, k7, k8 = jax.random.split(key, 8)

    # --- small case (single block, non-128 class dim handled without padding) ---
    N, C = 8, 16
    logits = jax.random.normal(k1, (N, C), dtype=jnp.float32)
    target1 = jax.random.randint(k2, (N,), 0, C, dtype=jnp.int32)
    target2 = jax.random.randint(k3, (N,), 0, C, dtype=jnp.int32)
    lmpas = jax.random.uniform(k4, (N,), dtype=jnp.float32)

    loss = mixup_cross_entropy_loss(logits, target1, target2, lmpas)
    jax.block_until_ready(loss)
    ref = _reference(logits, target1, target2, lmpas)
    assert jnp.allclose(loss, ref, atol=1e-5, rtol=1e-5), (loss, ref)

    # non-mixup path (target2 is None) -> specialized 1-target kernel
    loss_plain = mixup_cross_entropy_loss(logits, target1)
    jax.block_until_ready(loss_plain)
    ref_plain = _reference(logits, target1, target1, jnp.ones((N,), jnp.float32))
    assert jnp.allclose(loss_plain, ref_plain, atol=1e-5, rtol=1e-5), (loss_plain, ref_plain)

    # --- multi-block grid with a ragged last batch block + ragged class dim ---
    N2, C2 = 37, 130
    logits2 = jax.random.normal(k5, (N2, C2), dtype=jnp.float32)
    t1b = jax.random.randint(k6, (N2,), 0, C2, dtype=jnp.int32)
    t2b = jax.random.randint(k7, (N2,), 0, C2, dtype=jnp.int32)
    lmb = jax.random.uniform(k8, (N2,), dtype=jnp.float32)
    loss2 = mixup_cross_entropy_loss(logits2, t1b, t2b, lmb, block_n=16)
    jax.block_until_ready(loss2)
    ref2 = _reference(logits2, t1b, t2b, lmb)
    assert jnp.allclose(loss2, ref2, atol=1e-5, rtol=1e-5), (loss2, ref2)

    # --- bf16 logits pass straight through (halved HBM traffic), f32 math in-kernel ---
    logits_bf16 = logits.astype(jnp.bfloat16)
    loss_bf16 = mixup_cross_entropy_loss(logits_bf16, target1, target2, lmpas)
    jax.block_until_ready(loss_bf16)
    ref_bf16 = _reference(logits_bf16.astype(jnp.float32), target1, target2, lmpas)
    assert jnp.allclose(loss_bf16, ref_bf16, atol=1e-2, rtol=1e-2), (loss_bf16, ref_bf16)

    print("KERNEL_OK")
</pallas_src>

<mosaic_0001>
module attributes {stable_mosaic.version = 11 : i64} {
  func.func @_mixup_ce_kernel(%arg0: i32, %arg1: memref<8x16xf32, #tpu.memory_space<vmem>>, %arg2: memref<8x3xi32, #tpu.memory_space<vmem>>, %arg3: memref<1x8xf32, #tpu.memory_space<vmem>>) attributes {dimension_semantics = [#tpu.dimension_semantics<parallel>], iteration_bounds = array<i64: 1>, scalar_prefetch = 0 : i64, scratch_operands = 0 : i64, tpu.core_type = #tpu.core_type<tc>, window_params = [{transform_indices = @transform_0, window_bounds = array<i64: 8, 16>}, {transform_indices = @transform_1, window_bounds = array<i64: 8, 3>}, {transform_indices = @transform_2, window_bounds = array<i64: 1, 8>}]} {
    %c0 = arith.constant 0 : index
    %c0_0 = arith.constant 0 : index
    %0 = vector.load %arg1[%c0, %c0_0] : memref<8x16xf32, #tpu.memory_space<vmem>>, vector<8x16xf32>
    %1 = tpu.iota {dimensions = array<i32: 1>} : vector<8x16xi32>
    %cst = arith.constant dense<0xFF800000> : vector<8xf32>
    %2 = vector.multi_reduction <maximumf>, %0, %cst [1] : vector<8x16xf32> to vector<8xf32>
    %3 = vector.shape_cast %2 : vector<8xf32> to vector<8x1xf32>
    %4 = vector.broadcast %3 : vector<8x1xf32> to vector<8x16xf32>
    %5 = arith.subf %0, %4 : vector<8x16xf32>
    %6 = math.exp %5 : vector<8x16xf32>
    %cst_1 = arith.constant dense<0.000000e+00> : vector<8xf32>
    %7 = vector.multi_reduction <add>, %6, %cst_1 [1] : vector<8x16xf32> to vector<8xf32>
    %8 = vector.shape_cast %7 : vector<8xf32> to vector<8x1xf32>
    %9 = math.log %8 : vector<8x1xf32>
    %10 = arith.addf %3, %9 : vector<8x1xf32>
    %c0_2 = arith.constant 0 : index
    %c0_3 = arith.constant 0 : index
    %11 = vector.load %arg2[%c0_2, %c0_3] : memref<8x3xi32, #tpu.memory_space<vmem>>, vector<8x1xi32>
    %c0_4 = arith.constant 0 : index
    %c1 = arith.constant 1 : index
    %12 = vector.load %arg2[%c0_4, %c1] : memref<8x3xi32, #tpu.memory_space<vmem>>, vector<8x1xi32>
    %c0_5 = arith.constant 0 : index
    %c2 = arith.constant 2 : index
    %13 = vector.load %arg2[%c0_5, %c2] : memref<8x3xi32, #tpu.memory_space<vmem>>, vector<8x1xi32>
    %14 = tpu.bitcast %13 : vector<8x1xi32> -> vector<8x1xf32>
    %15 = vector.broadcast %11 : vector<8x1xi32> to vector<8x16xi32>
    %16 = arith.cmpi eq, %1, %15 : vector<8x16xi32>
    %cst_6 = arith.constant 0.000000e+00 : f32
    %17 = vector.shape_cast %14 : vector<8x1xf32> to vector<8x1xf32>
    %18 = vector.broadcast %17 : vector<8x1xf32> to vector<8x16xf32>
    %19 = vector.broadcast %cst_6 : f32 to vector<8x16xf32>
    %20 = arith.select %16, %18, %19 : vector<8x16xi1>, vector<8x16xf32>
    %21 = vector.broadcast %12 : vector<8x1xi32> to vector<8x16xi32>
    %22 = arith.cmpi eq, %1, %21 : vector<8x16xi32>
    %cst_7 = arith.constant 1.000000e+00 : f32
    %23 = vector.broadcast %cst_7 : f32 to vector<8x1xf32>
    %24 = arith.subf %23, %14 : vector<8x1xf32>
    %cst_8 = arith.constant 0.000000e+00 : f32
    %25 = vector.shape_cast %24 : vector<8x1xf32> to vector<8x1xf32>
    %26 = vector.broadcast %25 : vector<8x1xf32> to vector<8x16xf32>
    %27 = vector.broadcast %cst_8 : f32 to vector<8x16xf32>
    %28 = arith.select %22, %26, %27 : vector<8x16xi1>, vector<8x16xf32>
    %29 = arith.addf %20, %28 : vector<8x16xf32>
    %30 = arith.mulf %0, %29 : vector<8x16xf32>
    %cst_9 = arith.constant dense<0.000000e+00> : vector<8xf32>
    %31 = vector.multi_reduction <add>, %30, %cst_9 [1] : vector<8x16xf32> to vector<8xf32>
    %32 = vector.shape_cast %31 : vector<8xf32> to vector<8x1xf32>
    %33 = arith.subf %10, %32 : vector<8x1xf32>
    %34 = vector.shape_cast %33 : vector<8x1xf32> to vector<1x8xf32>
    %c0_10 = arith.constant 0 : index
    %c0_11 = arith.constant 0 : index
    %35 = vector.load %arg3[%c0_10, %c0_11] : memref<1x8xf32, #tpu.memory_space<vmem>>, vector<1x8xf32>
    tpu.vector_store %arg3[%c0_10, %c0_11], %34 {strides = array<i32>} : memref<1x8xf32, #tpu.memory_space<vmem>>, vector<1x8xf32>,
    return
  }
  func.func @transform_0(%arg0: i32) -> (i32, i32) {
    %c0_i32 = arith.constant 0 : i32
    %c0_i32_0 = arith.constant 0 : i32
    return %arg0, %c0_i32 : i32, i32
  }
  func.func @transform_1(%arg0: i32) -> (i32, i32) {
    %c0_i32 = arith.constant 0 : i32
    %c0_i32_0 = arith.constant 0 : i32
    return %arg0, %c0_i32 : i32, i32
  }
  func.func @transform_2(%arg0: i32) -> (i32, i32) {
    %c0_i32 = arith.constant 0 : i32
    %c0_i32_0 = arith.constant 0 : i32
    return %arg0, %c0_i32 : i32, i32
  }
}

</mosaic_0001>

<bundles_post_ra>
// kernel: tpu_custom_call.1
= control target key start
LH: loop header
LB: loop body
LE: loop exit
PB: predicated region body
PF: predicated region fallthrough
CT: control target
= control target key end

     0   :  { %7 = vsyncpa [#allocation3], 0  ;;  %s250_s0 = inlined_call_operand.hbm [shape: f32[8,16], index: 0, kind: input, shape index: {}]   ;;  %s251_s1 = inlined_call_operand.hbm [shape: s32[8,3], index: 1, kind: input, shape index: {}]   ;;  %s252_s2 = inlined_call_operand.hbm [shape: f32[1,8], index: 2, kind: output, shape index: {}]  }
   0x1   :  { %8 = vsyncpa [#allocation6], 0 }
   0x2   :  { %9 = vsyncpa [#allocation4], 0  ;;  %s190_s9 = smov [#allocation2]   ;;  %s191_s11 = smov [#allocation5]  }
   0x3   :  { %s16_s10 = sshll.u32 %s190_s9, 4  ;;  %s26_s12 = sshll.u32 %s191_s11, 4  ;;  %s17_s10 = int_to_ptr.vmem [resolvable:$true] %s16_s10  ;;  %s27_s12 = int_to_ptr.vmem [resolvable:$true] %s26_s12 }
   0x4   :  { %s118_s15 = scalar_lea.hbm %s250_s0, 128 }
   0x5   :  { %p119_p0 = scmp.ne.s32.totalorder %s250_s0, %s118_s15  ;;  %p122_p1 = scmp.lt.u32.totalorder %s118_s15, %s250_s0 }
   0x7   :  { %p124_p2 = pnand %p122_p1, %p119_p0 }
   0x9   :  { %127 = shalt.err (!%p124_p2)
}
   0xa   :  { %s128_s20 = scalar_lea.vmem %s17_s10, 128  ;;  %p133_p4 = scmp.lt.s32.totalorder %s17_s10, %s17_s10 }
   0xb   :  { %p129_p3 = scmp.ne.s32.totalorder %s17_s10, %s128_s20  ;;  %p134_p5 = scmp.lt.s32.totalorder %s128_s20, %s128_s20 }
   0xd   :  { %p135_p6 = por %p134_p5, %p133_p4 }
   0xf   :  { %p136_p7 = pnand %p135_p6, %p129_p3 }
  0x11   :  { %139 = shalt.err (!%p136_p7)
}
  0x12   :  { %19 = dma.hbm_to_vmem [thread:$0]  %s250_s0, 128, %s17_s10, [#allocation3]  }
  0x13   :  { %s140_s25 = scalar_lea.hbm %s251_s1, 128 }
  0x14   :  { %p141_p8 = scmp.ne.s32.totalorder %s251_s1, %s140_s25  ;;  %p144_p9 = scmp.lt.u32.totalorder %s140_s25, %s251_s1 }
  0x16   :  { %p146_p10 = pnand %p144_p9, %p141_p8 }
  0x18   :  { %149 = shalt.err (!%p146_p10)
}
  0x19   :  { %s150_s30 = scalar_lea.vmem %s27_s12, 128  ;;  %p155_p12 = scmp.lt.s32.totalorder %s27_s12, %s27_s12 }
  0x1a   :  { %p151_p11 = scmp.ne.s32.totalorder %s27_s12, %s150_s30  ;;  %p156_p13 = scmp.lt.s32.totalorder %s150_s30, %s150_s30 }
  0x1c   :  { %p157_p0 = por %p156_p13, %p155_p12 }
  0x1e   :  { %p158_p1 = pnand %p157_p0, %p151_p11 }
  0x20   :  { %161 = shalt.err (!%p158_p1)
}
  0x21   :  { %29 = dma.hbm_to_vmem [thread:$0]  %s251_s1, 128, %s27_s12, [#allocation6]  }
  0x22   :  { %184 = dma.done.wait [#allocation3], 128  }
  0x23   :  { %185 = vsyncadd [#allocation3], 4294967168 }
  0x24   :  { %186 = dma.done.wait [#allocation6], 128  }
  0x25   :  { %187 = vsyncadd [#allocation6], 4294967168  ;;  %v192_v0 = vmov 1   ;;  %v193_v1 = vmov 0   ;;  %vm39_vm0 = vcmask 130048   ;;  %v36_v2 = vld [vmem:[#allocation2] sm:$0xff]  ;;  %v37_v8 = vlaneseq }
  0x26   :  { %111 = vset.pattern.permute.xlu1 %v192_v0  ;;  %110 = vset.pattern.permute.xlu0 %v193_v1  ;;  %v52_v3 = vld [vmem:[#allocation5] sm:$0xff]  ;;  %v40_v4 = vsel %vm39_vm0, %v36_v2, -inf  ;;  %v194_v5 = vmov 2   ;;  %s195_s1 = smov [#allocation7]   ;;  %vm86_vm3 = vcmask 57344  }
  0x27   :  { %64 = vperm.xlu1 %111, %v52_v3   ;;  %41 = vmax.xlane.f32.xlu0 %v40_v4  ;;  %v67_v6 = vsub.f32 1.0, %v52_v3  ;;  %v38_v12 = vand.u32 127, %v37_v8  ;;  %v82_v24 = vshrl.u32 %v37_v8, 7  ;;  %s94_s4 = sshll.u32 %s195_s1, 4  ;;  %s95_s4 = int_to_ptr.vmem [resolvable:$true] %s94_s4 }
  0x28   :  { %s162_s5 = scalar_lea.vmem %s95_s4, 16  ;;  %s166_s6 = scalar_lea.vmem %s95_s4, 32 }
  0x29   :  { %v83_v28 = vsub.s32 %v38_v12, %v82_v24  ;;  %p163_p2 = scmp.ne.s32.totalorder %s95_s4, %s162_s5  ;;  %p167_p3 = scmp.lt.s32.totalorder %s95_s4, %s95_s4 }
  0x2a   :  { %p168_p4 = scmp.lt.s32.totalorder %s166_s6, %s162_s5 }
  0x2b   :  { %112 = vset.pattern.permute.xlu1 %v194_v5 }
  0x2c   :  { %59 = vperm.xlu1 %112, %v52_v3   ;;  %p169_p5 = por %p168_p4, %p167_p3 }
  0x2e   :  { %p170_p6 = pnand %p169_p5, %p163_p2 }
  0x30   :  { %70 = vperm.xlu1 %112, %v67_v6  }
  0x3d   :  { %55 = vperm.xlu0 %110, %v52_v3  }
  0x41   :  { %113 = vset.pattern.permute.xlu0 %v194_v5 }
  0xa6   :  { %v65_v7 = vpop.permute.xlu1 %64 }
  0xa7   :  { %vm66_vm1 = vcmp.eq.s32.totalorder %v38_v12, %v65_v7 }
  0xab   :  { %v60_v9 = vpop.permute.xlu1 %59 }
  0xaf   :  { %v71_v14 = vpop.permute.xlu1 %70 }
  0xb0   :  { %v73_v16 = vsel %vm66_vm1, %v71_v14, 0.0 }
  0xb4   :  { %v42_v10 = vpop.xlane.xlu0 %41 }
  0xb5   :  { %v43_v11 = vsub.f32 %v36_v2, %v42_v10 }
  0xb7   :  { %v44_v13 = vmul.f32 1.442695, %v43_v11 }
  0xb9   :  { %114 = vpow2.f32 %v44_v13 }
  0xbc   :  { %v56_v15 = vpop.permute.xlu0 %55 }
  0xbd   :  { %vm57_vm2 = vcmp.eq.s32.totalorder %v38_v12, %v56_v15 }
  0xbe   :  { %v62_v17 = vsel %vm57_vm2, %v60_v9, 0.0 }
  0xbf   :  { %v74_v18 = vadd.f32 %v73_v16, %v62_v17 }
  0xc1   :  { %v75_v19 = vmul.f32 %v74_v18, %v36_v2 }
  0xc3   :  { %v115_v20 = vpop.eup %114  ;;  %v76_v21 = vsel %vm39_vm0, %v75_v19, 0.0 }
  0xc4   :  { %v46_v22 = vsel %vm39_vm0, %v115_v20, 0.0  ;;  %77 = vadd.xlane.f32.xlu0 %v76_v21 }
  0xc5   :  { %47 = vadd.xlane.f32.xlu1 %v46_v22 }
 0x151   :  { %v78_v29 = vpop.xlane.xlu0 %77 }
 0x152   :  { %v48_v23 = vpop.xlane.xlu1 %47 }
 0x153   :  { %116 = vlog2.f32 %v48_v23 }
 0x15d   :  { %v117_v25 = vpop.eup %116 }
 0x15e   :  { %v50_v26 = vmul.f32 0.6931472, %v117_v25 }
 0x160   :  { %v51_v27 = vadd.f32 %v50_v26, %v42_v10 }
 0x162   :  { %v79_v30 = vsub.f32 %v51_v27, %v78_v29 }
 0x164   :  { %v84_v31 = vrot.slane %v79_v30, %v83_v28 }
 0x166   :  { %87 = vst.msk [vmem:[#allocation7] sm:$0x1] %vm86_vm3, %v84_v31 }
 0x167   :  { %173 = shalt.err (!%p170_p6)
}
 0x168   :  { %s174_s9 = scalar_lea.hbm %s252_s2, 16 }
 0x169   :  { %p175_p7 = scmp.ne.s32.totalorder %s252_s2, %s174_s9  ;;  %p178_p8 = scmp.lt.u32.totalorder %s174_s9, %s252_s2 }
 0x16b   :  { %p180_p9 = pnand %p178_p8, %p175_p7 }
 0x16d   :  { %183 = shalt.err (!%p180_p9)
}
 0x16e   :  { %97 = dma.vmem_to_hbm [thread:$0]  %s95_s4, 16, %s252_s2, [#allocation4]  }
 0x16f   :  { %188 = dma.done.wait [#allocation4], 16  }
 0x170   :  { %189 = vsyncadd [#allocation4], 4294967280 }
 0x171   :  { %101 = vsyncpa [#allocation3], 1 }
 0x172   :  { %102 = vsyncpa [#allocation6], 1 }
 0x173   :  { %103 = vsyncpa [#allocation4], 1 }

</bundles_post_ra>
